<compile_context>
chip_gen: v5e
topology: v5e:2x2
jax: 0.10.0
libtpu: 0.0.40
codegen_flags: <defaults>
</compile_context>

<pallas_src>
import functools

import jax
import jax.numpy as jnp
from jax.experimental import pallas as pl
from jax.experimental.pallas import tpu as pltpu


COSINE_SCALE = 20.0   # cfg.MODEL.ROI_HEADS.COSINE_SCALE (fixed; not the learnable -1 case)
EPS = 1e-5


def _round_up(a: int, b: int) -> int:
    return ((a + b - 1) // b) * b


def _fused_output_kernel(x_ref, wt_ref, bias_ref, mask_ref, out_ref):
    """One N-tile of the fused (cls + bbox) output layer.

    x_ref    : (tm, D)      f32 or bf16 feature tile
    wt_ref   : (D, C_pad)   same dtype as x -- [scale*W_cls_normalized ; W_bbox ; 0-pad]^T
    bias_ref : (1, C_pad)   f32 -- zeros on cls columns, b_bbox on bbox columns
    mask_ref : (1, C_pad)   f32 -- 1.0 on cls columns, 0.0 elsewhere
    out_ref  : (tm, C_pad)  f32 -- cols [0, C1) = scores, cols [C1, C1+B) = deltas
    """
    x = x_ref[...]

    # Row-wise L2 norm in f32 (exact in the f32 path; EUP handles the reciprocal).
    x32 = x.astype(jnp.float32)
    norm = jnp.sqrt(jnp.sum(x32 * x32, axis=1, keepdims=True))        # (tm, 1)
    inv = pl.reciprocal(norm + EPS, approx=True)                      # (tm, 1), ~2^-12 rel err

    # Single lane-dense MXU matmul covering both heads, f32 accumulation.
    raw = jnp.dot(x, wt_ref[...], preferred_element_type=jnp.float32)  # (tm, C_pad)

    mask = mask_ref[...]                                               # (1, C_pad)
    mult = mask * inv + (jnp.float32(1.0) - mask)                      # (tm, C_pad)
    out_ref[...] = raw * mult + bias_ref[...]


def _pick_tile_rows(n_rows, d, c_pad, x_itemsize, w_itemsize, requested_tm):
    """Generation-aware row-tile size + vmem limit."""
    try:
        vmem_cap = int(pltpu.get_tpu_info().vmem_capacity_bytes)
    except Exception:
        vmem_cap = 64 << 20   # smallest per-core VMEM across v5e / v6e / v7x

    budget = int(vmem_cap * 0.6)                              # headroom for compiler scratch
    resident = d * c_pad * w_itemsize + 2 * (c_pad * 4)       # weight (single-buffered) + bias + mask
    per_row = 2 * d * x_itemsize + 2 * c_pad * 4              # dbl-buffered x row + dbl-buffered out row
    tm_cap = max((budget - resident) // per_row, 8)

    tm = max(8, min(int(requested_tm), int(tm_cap)))
    if n_rows > 8:
        # Keep >= 2 grid steps so the "parallel" axis can shard across v7x's 2 TensorCores.
        tm = min(tm, _round_up(-(-n_rows // 2), 8))
    tm = min(tm, _round_up(n_rows, 8))
    tm = max(8, (tm // 8) * 8)

    usage = resident + tm * per_row
    vmem_limit = int(min(vmem_cap, max(32 << 20, int(usage * 1.3) + (2 << 20))))
    return tm, vmem_limit


def cosine_sim_output_layers(x, w_cls, w_bbox, b_bbox, *, scale=COSINE_SCALE,
                             compute_dtype=jnp.float32, tile_m=512):
    """x: (N, C, H, W) or (N, D).

    Returns (scores (N, num_cls+1), deltas (N, num_bbox_cls*box_dim)), both f32.
    compute_dtype: dtype of the matmul operands (f32 or bf16); accumulation and the
                   norm/scale math stay in f32.  On v5e, prefer bf16 when x is already
                   bf16 upstream (halves the dominant HBM traffic, avoids f32 MXU passes).
    tile_m: requested rows per grid step (clamped per-generation against VMEM).
    """
    if x.ndim > 2:
        x = x.reshape(x.shape[0], -1)
    N, D = int(x.shape[0]), int(x.shape[1])
    C1 = int(w_cls.shape[0])
    B = int(w_bbox.shape[0])
    C_out = C1 + B
    C_pad = _round_up(C_out, 128)

    compute_dtype = jnp.dtype(compute_dtype)
    x_itemsize = compute_dtype.itemsize
    w_itemsize = compute_dtype.itemsize

    # ---- One-time weight prep (hoisted out of the kernel / grid loop) ----
    # PyTorch normalizes cls weights in place before the matmul; `scale` is folded in here.
    wc = w_cls.astype(jnp.float32)
    wc_n = wc * (float(scale) / (jnp.linalg.norm(wc, axis=1, keepdims=True) + EPS))
    w_comb = jnp.concatenate([wc_n, w_bbox.astype(jnp.float32)], axis=0)   # (C_out, D)
    w_comb = jnp.pad(w_comb, ((0, C_pad - C_out), (0, 0)))                 # (C_pad, D)
    w_t = w_comb.T.astype(compute_dtype)                                   # (D, C_pad)

    bias = jnp.zeros((1, C_pad), jnp.float32).at[0, C1:C1 + B].set(
        b_bbox.astype(jnp.float32))
    cls_mask = (jnp.arange(C_pad, dtype=jnp.int32) < C1).astype(jnp.float32)[None, :]

    # ---- x: no D padding, no dtype round-trip unless a different compute dtype is asked ----
    x_in = x if x.dtype == compute_dtype else x.astype(compute_dtype)
    n_rows = N
    if N < 8:
        # Tiny-N safety: keep block row-dim (>=8) within the array. Zero rows give
        # inv = 1/eps with raw = 0 -> finite junk that is sliced off below.
        x_in = jnp.pad(x_in, ((0, 8 - N), (0, 0)))
        n_rows = 8

    tm, vmem_limit = _pick_tile_rows(n_rows, D, C_pad, x_itemsize, w_itemsize, tile_m)
    num_tiles = -(-n_rows // tm)

    cost = pl.CostEstimate(
        flops=int(2 * n_rows * D * C_pad + 6 * n_rows * C_pad + 3 * n_rows * D),
        transcendentals=int(n_rows),
        bytes_accessed=int(n_rows * D * x_itemsize + D * C_pad * w_itemsize
                           + n_rows * C_pad * 4 + 2 * C_pad * 4),
    )

    def build(single_buffer_resident):
        resident_kw = (dict(pipeline_mode=pl.Buffered(1))
                       if single_buffer_resident else {})
        grid_spec = pltpu.PrefetchScalarGridSpec(
            num_scalar_prefetch=0,
            grid=(num_tiles,),
            in_specs=[
                pl.BlockSpec((tm, D), lambda i: (i, 0)),                   # x tile (pipelined)
                pl.BlockSpec((D, C_pad), lambda i: (0, 0), **resident_kw),  # weights resident
                pl.BlockSpec((1, C_pad), lambda i: (0, 0), **resident_kw),  # bias resident
                pl.BlockSpec((1, C_pad), lambda i: (0, 0), **resident_kw),  # cls mask resident
            ],
            out_specs=pl.BlockSpec((tm, C_pad), lambda i: (i, 0)),
        )
        return pl.pallas_call(
            _fused_output_kernel,
            out_shape=jax.ShapeDtypeStruct((n_rows, C_pad), jnp.float32),
            grid_spec=grid_spec,
            compiler_params=pltpu.CompilerParams(
                dimension_semantics=("parallel",),   # independent N tiles -> v7x megacore
                vmem_limit_bytes=vmem_limit,
            ),
            cost_estimate=cost,
        )

    try:
        out = build(True)(x_in, w_t, bias, cls_mask)
    except Exception:
        # Fallback if this runtime rejects Buffered(1) on resident operands.
        out = build(False)(x_in, w_t, bias, cls_mask)

    scores = out[:N, :C1]
    deltas = out[:N, C1:C1 + B]
    return scores, deltas


def reference_forward(x, w_cls, w_bbox, b_bbox, scale=COSINE_SCALE):
    """Pure-JAX reference mirroring the PyTorch forward (high-precision matmuls)."""
    if x.ndim > 2:
        x = x.reshape(x.shape[0], -1)
    x = x.astype(jnp.float32)
    x_norm = jnp.linalg.norm(x, axis=1, keepdims=True)
    x_n = x / (x_norm + EPS)
    wc = w_cls.astype(jnp.float32)
    wc_norm = jnp.linalg.norm(wc, axis=1, keepdims=True)
    wc_n = wc / (wc_norm + EPS)
    scores = scale * jnp.dot(x_n, wc_n.T, precision=jax.lax.Precision.HIGHEST)
    deltas = jnp.dot(x, w_bbox.astype(jnp.float32).T,
                     precision=jax.lax.Precision.HIGHEST) + b_bbox[None, :].astype(jnp.float32)
    return scores, deltas


if __name__ == "__main__":
    # Module hyper-params consistent with the forward:
    #   x: (N=2, C=4, H=16, W=16) -> D = 1024
    #   num_classes = 7 -> cls_score weight: (8, 1024), no bias
    #   cls_agnostic_bbox_reg = False, box_dim = 4 -> bbox_pred: (28, 1024) + (28,) bias
    key = jax.random.PRNGKey(0)
    k_x, k_wc, k_wb, k_bb, k_x2 = jax.random.split(key, 5)

    N, C, H, W = 2, 4, 16, 16
    D = C * H * W
    num_classes = 7
    box_dim = 4
    num_bbox_reg_classes = num_classes  # cls_agnostic_bbox_reg = False

    x = jax.random.normal(k_x, (N, C, H, W), dtype=jnp.float32)
    w_cls = 0.01 * jax.random.normal(k_wc, (num_classes + 1, D), dtype=jnp.float32)
    w_bbox = 0.001 * jax.random.normal(k_wb, (num_bbox_reg_classes * box_dim, D), dtype=jnp.float32)
    # Nonzero bias to actually exercise the bias-add path (PyTorch inits it to 0).
    b_bbox = 0.1 * jax.random.normal(k_bb, (num_bbox_reg_classes * box_dim,), dtype=jnp.float32)

    # --- f32 path (default), tiny N (single padded 8-row tile) ---
    scores, deltas = cosine_sim_output_layers(x, w_cls, w_bbox, b_bbox)
    jax.block_until_ready((scores, deltas))
    ref_scores, ref_deltas = reference_forward(x, w_cls, w_bbox, b_bbox)
    assert scores.shape == (N, num_classes + 1)
    assert deltas.shape == (N, num_bbox_reg_classes * box_dim)
    assert jnp.allclose(scores, ref_scores, atol=2e-3, rtol=2e-3)
    assert jnp.allclose(deltas, ref_deltas, atol=2e-3, rtol=2e-3)

    # --- larger N + bf16 matmul operands (multi-tile grid, partial last block, halved traffic) ---
    N2 = 300
    x2 = jax.random.normal(k_x2, (N2, C, H, W), dtype=jnp.float32)
    scores2, deltas2 = cosine_sim_output_layers(
        x2, w_cls, w_bbox, b_bbox, compute_dtype=jnp.bfloat16, tile_m=128)
    jax.block_until_ready((scores2, deltas2))
    ref_scores2, ref_deltas2 = reference_forward(x2, w_cls, w_bbox, b_bbox)
    assert scores2.shape == (N2, num_classes + 1)
    assert deltas2.shape == (N2, num_bbox_reg_classes * box_dim)
    assert jnp.allclose(scores2, ref_scores2, atol=3e-2, rtol=3e-2)
    assert jnp.allclose(deltas2, ref_deltas2, atol=3e-2, rtol=3e-2)

    print("KERNEL_OK")
</pallas_src>

<mosaic_0001>
module attributes {stable_mosaic.version = 11 : i64} {
  func.func @_fused_output_kernel(%arg0: i32, %arg1: memref<8x1024xf32, #tpu.memory_space<vmem>>, %arg2: memref<1024x128xf32, #tpu.memory_space<vmem>>, %arg3: memref<1x128xf32, #tpu.memory_space<vmem>>, %arg4: memref<1x128xf32, #tpu.memory_space<vmem>>, %arg5: memref<8x128xf32, #tpu.memory_space<vmem>>) attributes {dimension_semantics = [#tpu.dimension_semantics<parallel>], iteration_bounds = array<i64: 1>, scalar_prefetch = 0 : i64, scratch_operands = 0 : i64, tpu.core_type = #tpu.core_type<tc>, window_params = [{transform_indices = @transform_0, window_bounds = array<i64: 8, 1024>}, {pipeline_mode = #tpu.pipeline_mode<synchronous>, transform_indices = @transform_1, window_bounds = array<i64: 1024, 128>}, {pipeline_mode = #tpu.pipeline_mode<synchronous>, transform_indices = @transform_2, window_bounds = array<i64: 1, 128>}, {pipeline_mode = #tpu.pipeline_mode<synchronous>, transform_indices = @transform_3, window_bounds = array<i64: 1, 128>}, {transform_indices = @transform_4, window_bounds = array<i64: 8, 128>}]} {
    %c0 = arith.constant 0 : index
    %c0_0 = arith.constant 0 : index
    %0 = vector.load %arg1[%c0, %c0_0] : memref<8x1024xf32, #tpu.memory_space<vmem>>, vector<8x1024xf32>
    %1 = arith.mulf %0, %0 : vector<8x1024xf32>
    %cst = arith.constant dense<0.000000e+00> : vector<8xf32>
    %2 = vector.multi_reduction <add>, %1, %cst [1] : vector<8x1024xf32> to vector<8xf32>
    %3 = vector.shape_cast %2 : vector<8xf32> to vector<8x1xf32>
    %4 = math.sqrt %3 : vector<8x1xf32>
    %cst_1 = arith.constant 9.99999974E-6 : f32
    %5 = vector.broadcast %cst_1 : f32 to vector<8x1xf32>
    %6 = arith.addf %4, %5 : vector<8x1xf32>
    %7 = tpu.reciprocal %6 {approx = true} : vector<8x1xf32> -> vector<8x1xf32>
    %c0_2 = arith.constant 0 : index
    %c0_3 = arith.constant 0 : index
    %8 = vector.load %arg2[%c0_2, %c0_3] : memref<1024x128xf32, #tpu.memory_space<vmem>>, vector<1024x128xf32>
    %cst_4 = arith.constant dense<0.000000e+00> : vector<8x128xf32>
    %9 = tpu.matmul %0, %8, %cst_4 {dimension_numbers = #tpu.dot_dimension_numbers<[1], [0], [0], [1], [0, 0, 1, 1], [], []>} : vector<8x1024xf32>, vector<1024x128xf32>, vector<8x128xf32> -> vector<8x128xf32>
    %c0_5 = arith.constant 0 : index
    %c0_6 = arith.constant 0 : index
    %10 = vector.load %arg4[%c0_5, %c0_6] : memref<1x128xf32, #tpu.memory_space<vmem>>, vector<1x128xf32>
    %11 = vector.broadcast %10 : vector<1x128xf32> to vector<8x128xf32>
    %12 = vector.broadcast %7 : vector<8x1xf32> to vector<8x128xf32>
    %13 = arith.mulf %11, %12 : vector<8x128xf32>
    %cst_7 = arith.constant 1.000000e+00 : f32
    %14 = vector.broadcast %cst_7 : f32 to vector<1x128xf32>
    %15 = arith.subf %14, %10 : vector<1x128xf32>
    %16 = vector.broadcast %15 : vector<1x128xf32> to vector<8x128xf32>
    %17 = arith.addf %13, %16 : vector<8x128xf32>
    %18 = arith.mulf %9, %17 : vector<8x128xf32>
    %c0_8 = arith.constant 0 : index
    %c0_9 = arith.constant 0 : index
    %19 = vector.load %arg3[%c0_8, %c0_9] : memref<1x128xf32, #tpu.memory_space<vmem>>, vector<1x128xf32>
    %20 = vector.broadcast %19 : vector<1x128xf32> to vector<8x128xf32>
    %21 = arith.addf %18, %20 : vector<8x128xf32>
    %c0_10 = arith.constant 0 : index
    %c0_11 = arith.constant 0 : index
    %22 = vector.load %arg5[%c0_10, %c0_11] : memref<8x128xf32, #tpu.memory_space<vmem>>, vector<8x128xf32>
    tpu.vector_store %arg5[%c0_10, %c0_11], %21 {strides = array<i32>} : memref<8x128xf32, #tpu.memory_space<vmem>>, vector<8x128xf32>,
    return
  }
  func.func @transform_0(%arg0: i32) -> (i32, i32) {
    %c0_i32 = arith.constant 0 : i32
    %c0_i32_0 = arith.constant 0 : i32
    return %arg0, %c0_i32 : i32, i32
  }
  func.func @transform_1(%arg0: i32) -> (i32, i32) {
    %c0_i32 = arith.constant 0 : i32
    %c0_i32_0 = arith.constant 0 : i32
    %c0_i32_1 = arith.constant 0 : i32
    return %c0_i32, %c0_i32_0 : i32, i32
  }
  func.func @transform_2(%arg0: i32) -> (i32, i32) {
    %c0_i32 = arith.constant 0 : i32
    %c0_i32_0 = arith.constant 0 : i32
    %c0_i32_1 = arith.constant 0 : i32
    return %c0_i32, %c0_i32_0 : i32, i32
  }
  func.func @transform_3(%arg0: i32) -> (i32, i32) {
    %c0_i32 = arith.constant 0 : i32
    %c0_i32_0 = arith.constant 0 : i32
    %c0_i32_1 = arith.constant 0 : i32
    return %c0_i32, %c0_i32_0 : i32, i32
  }
  func.func @transform_4(%arg0: i32) -> (i32, i32) {
    %c0_i32 = arith.constant 0 : i32
    %c0_i32_0 = arith.constant 0 : i32
    return %arg0, %c0_i32 : i32, i32
  }
}

module attributes {stable_mosaic.version = 11 : i64} {
  func.func @_fused_output_kernel(%arg0: i32, %arg1: memref<8x1024xf32, #tpu.memory_space<vmem>>, %arg2: memref<1024x128xf32, #tpu.memory_space<vmem>>, %arg3: memref<1x128xf32, #tpu.memory_space<vmem>>, %arg4: memref<1x128xf32, #tpu.memory_space<vmem>>, %arg5: memref<8x128xf32, #tpu.memory_space<vmem>>) attributes {dimension_semantics = [#tpu.dimension_semantics<parallel>], iteration_bounds = array<i64: 1>, scalar_prefetch = 0 : i64, scratch_operands = 0 : i64, tpu.core_type = #tpu.core_type<tc>, window_params = [{transform_indices = @transform_0, window_bounds = array<i64: 8, 1024>}, {pipeline_mode = #tpu.pipeline_mode<synchronous>, transform_indices = @transform_1, window_bounds = array<i64: 1024, 128>}, {pipeline_mode = #tpu.pipeline_mode<synchronous>, transform_indices = @transform_2, window_bounds = array<i64: 1, 128>}, {pipeline_mode = #tpu.pipeline_mode<synchronous>, transform_indices = @transform_3, window_bounds = array<i64: 1, 128>}, {transform_indices = @transform_4, window_bounds = array<i64: 8, 128>}]} {
    %c0 = arith.constant 0 : index
    %c0_0 = arith.constant 0 : index
    %0 = vector.load %arg1[%c0, %c0_0] : memref<8x1024xf32, #tpu.memory_space<vmem>>, vector<8x1024xf32>
    %1 = arith.mulf %0, %0 : vector<8x1024xf32>
    %cst = arith.constant dense<0.000000e+00> : vector<8xf32>
    %2 = vector.multi_reduction <add>, %1, %cst [1] : vector<8x1024xf32> to vector<8xf32>
    %3 = vector.shape_cast %2 : vector<8xf32> to vector<8x1xf32>
    %4 = math.sqrt %3 : vector<8x1xf32>
    %cst_1 = arith.constant 9.99999974E-6 : f32
    %5 = vector.broadcast %cst_1 : f32 to vector<8x1xf32>
    %6 = arith.addf %4, %5 : vector<8x1xf32>
    %7 = tpu.reciprocal %6 {approx = true} : vector<8x1xf32> -> vector<8x1xf32>
    %c0_2 = arith.constant 0 : index
    %c0_3 = arith.constant 0 : index
    %8 = vector.load %arg2[%c0_2, %c0_3] : memref<1024x128xf32, #tpu.memory_space<vmem>>, vector<1024x128xf32>
    %cst_4 = arith.constant dense<0.000000e+00> : vector<8x128xf32>
    %9 = tpu.matmul %0, %8, %cst_4 {dimension_numbers = #tpu.dot_dimension_numbers<[1], [0], [0], [1], [0, 0, 1, 1], [], []>} : vector<8x1024xf32>, vector<1024x128xf32>, vector<8x128xf32> -> vector<8x128xf32>
    %c0_5 = arith.constant 0 : index
    %c0_6 = arith.constant 0 : index
    %10 = vector.load %arg4[%c0_5, %c0_6] : memref<1x128xf32, #tpu.memory_space<vmem>>, vector<1x128xf32>
    %11 = vector.broadcast %10 : vector<1x128xf32> to vector<8x128xf32>
    %12 = vector.broadcast %7 : vector<8x1xf32> to vector<8x128xf32>
    %13 = arith.mulf %11, %12 : vector<8x128xf32>
    %cst_7 = arith.constant 1.000000e+00 : f32
    %14 = vector.broadcast %cst_7 : f32 to vector<1x128xf32>
    %15 = arith.subf %14, %10 : vector<1x128xf32>
    %16 = vector.broadcast %15 : vector<1x128xf32> to vector<8x128xf32>
    %17 = arith.addf %13, %16 : vector<8x128xf32>
    %18 = arith.mulf %9, %17 : vector<8x128xf32>
    %c0_8 = arith.constant 0 : index
    %c0_9 = arith.constant 0 : index
    %19 = vector.load %arg3[%c0_8, %c0_9] : memref<1x128xf32, #tpu.memory_space<vmem>>, vector<1x128xf32>
    %20 = vector.broadcast %19 : vector<1x128xf32> to vector<8x128xf32>
    %21 = arith.addf %18, %20 : vector<8x128xf32>
    %c0_10 = arith.constant 0 : index
    %c0_11 = arith.constant 0 : index
    %22 = vector.load %arg5[%c0_10, %c0_11] : memref<8x128xf32, #tpu.memory_space<vmem>>, vector<8x128xf32>
    tpu.vector_store %arg5[%c0_10, %c0_11], %21 {strides = array<i32>} : memref<8x128xf32, #tpu.memory_space<vmem>>, vector<8x128xf32>,
    return
  }
  func.func @transform_0(%arg0: i32) -> (i32, i32) {
    %c0_i32 = arith.constant 0 : i32
    %c0_i32_0 = arith.constant 0 : i32
    return %arg0, %c0_i32 : i32, i32
  }
  func.func @transform_1(%arg0: i32) -> (i32, i32) {
    %c0_i32 = arith.constant 0 : i32
    %c0_i32_0 = arith.constant 0 : i32
    %c0_i32_1 = arith.constant 0 : i32
    return %c0_i32, %c0_i32_0 : i32, i32
  }
  func.func @transform_2(%arg0: i32) -> (i32, i32) {
    %c0_i32 = arith.constant 0 : i32
    %c0_i32_0 = arith.constant 0 : i32
    %c0_i32_1 = arith.constant 0 : i32
    return %c0_i32, %c0_i32_0 : i32, i32
  }
  func.func @transform_3(%arg0: i32) -> (i32, i32) {
    %c0_i32 = arith.constant 0 : i32
    %c0_i32_0 = arith.constant 0 : i32
    %c0_i32_1 = arith.constant 0 : i32
    return %c0_i32, %c0_i32_0 : i32, i32
  }
  func.func @transform_4(%arg0: i32) -> (i32, i32) {
    %c0_i32 = arith.constant 0 : i32
    %c0_i32_0 = arith.constant 0 : i32
    return %arg0, %c0_i32 : i32, i32
  }
}

</mosaic_0001>

<bundles_post_ra>
// kernel: tpu_custom_call.1
= control target key start
LH: loop header
LB: loop body
LE: loop exit
PB: predicated region body
PF: predicated region fallthrough
CT: control target
= control target key end

     0   :  { %9 = vsyncpa [#allocation3], 0  ;;  %s587_s0 = inlined_call_operand.hbm [shape: f32[8,1024], index: 0, kind: input, shape index: {}]   ;;  %s588_s1 = inlined_call_operand.hbm [shape: f32[1024,128], index: 1, kind: input, shape index: {}]   ;;  %s589_s2 = inlined_call_operand.vmem [shape: f32[1,128], index: 2, kind: input, shape index: {}]   ;;  %s590_s3 = inlined_call_operand.vmem [shape: f32[1,128], index: 3, kind: input, shape index: {}]   ;;  %s591_s4 = inlined_call_operand.hbm [shape: f32[8,128], index: 4, kind: output, shape index: {}]  }
   0x1   :  { %10 = vsyncpa [#allocation6], 0 }
   0x2   :  { %11 = vsyncpa [#allocation4], 0  ;;  %s17_s17 = sshll.u32 %s587_s0, 4  ;;  %s499_s18 = smov [#allocation2]   ;;  %s18_s17 = int_to_ptr.hbm [resolvable:$true] %s17_s17 }
   0x3   :  { %s19_s19 = sshll.u32 %s499_s18, 4  ;;  %s27_s22 = sshll.u32 %s588_s1, 4  ;;  %s20_s19 = int_to_ptr.vmem [resolvable:$true] %s19_s19  ;;  %s28_s22 = int_to_ptr.hbm [resolvable:$true] %s27_s22 }
   0x4   :  { %22 = dma.hbm_to_vmem [thread:$0]  %s18_s17, 1024, %s20_s19, [#allocation3]  }
   0x5   :  { %s500_s23 = smov [#allocation5]   ;;  %s501_s25 = smov 128  }
   0x6   :  { %s29_s24 = sshll.u32 %s500_s23, 4  ;;  %s502_s26 = smov 8   ;;  %s30_s24 = int_to_ptr.vmem [resolvable:$true] %s29_s24 }
   0x7   :  { %35 = dma.hbm_to_vmem [thread:$0]  %s28_s22, 16384, %s30_s24, [#allocation6], %s501_s25, %s501_s25, %s502_s26  }
   0x8   :  { %493 = dma.done.wait [#allocation3], 1024  }
   0x9   :  { %494 = vsyncadd [#allocation3], 4294966272 }
   0xa   :  { %495 = dma.done.wait [#allocation6], 16384  }
   0xb   :  { %496 = vsyncadd [#allocation6], 4294950912  ;;  %v102_v0 = vld [vmem:[#allocation5 + $0x78] sm:$0xff]  ;;  %v101_v2 = vld [vmem:[#allocation5 + $0x70] sm:$0xff]  ;;  %s503_s5 = smov [#allocation7]  }
   0xc   :  { %v134_v1 = vld [vmem:[#allocation5 + $0x178] sm:$0xff]  ;;  %215 = vmatpush.msra.mxu0 %v102_v0  ;;  %v133_v4 = vld [vmem:[#allocation5 + $0x170] sm:$0xff]  ;;  %v100_v6 = vld [vmem:[#allocation5 + $0x68] sm:$0xff]  ;;  %s397_s6 = sshll.u32 %s503_s5, 4  ;;  %s398_s6 = int_to_ptr.vmem [resolvable:$true] %s397_s6 }
   0xd   :  { %255 = vmatpush.msra.mxu2 %v134_v1  ;;  %v118_v3 = vld [vmem:[#allocation5 + $0xf8] sm:$0xff]  ;;  %v117_v7 = vld [vmem:[#allocation5 + $0xf0] sm:$0xff]  ;;  %v132_v8 = vld [vmem:[#allocation5 + $0x168] sm:$0xff] }
   0xe   :  { %v150_v5 = vld [vmem:[#allocation5 + $0x1f8] sm:$0xff]  ;;  %235 = vmatpush.msra.mxu1 %v118_v3  ;;  %216 = vmatpush.msra.mxu0 %v101_v2  ;;  %v149_v9 = vld [vmem:[#allocation5 + $0x1f0] sm:$0xff]  ;;  %v116_v10 = vld [vmem:[#allocation5 + $0xe8] sm:$0xff] }
   0xf   :  { %275 = vmatpush.msra.mxu3 %v150_v5  ;;  %256 = vmatpush.msra.mxu2 %v133_v4  ;;  %v99_v11 = vld [vmem:[#allocation5 + $0x60] sm:$0xff]  ;;  %v148_v13 = vld [vmem:[#allocation5 + $0x1e8] sm:$0xff]  ;;  %v98_v16 = vld [vmem:[#allocation5 + $0x58] sm:$0xff] }
  0x10   :  { %236 = vmatpush.msra.mxu1 %v117_v7  ;;  %v131_v12 = vld [vmem:[#allocation5 + $0x160] sm:$0xff]  ;;  %217 = vmatpush.msra.mxu0 %v100_v6  ;;  %v130_v17 = vld [vmem:[#allocation5 + $0x158] sm:$0xff]  ;;  %v97_v20 = vld [vmem:[#allocation5 + $0x50] sm:$0xff] }
  0x11   :  { %276 = vmatpush.msra.mxu3 %v149_v9  ;;  %257 = vmatpush.msra.mxu2 %v132_v8  ;;  %v115_v14 = vld [vmem:[#allocation5 + $0xe0] sm:$0xff]  ;;  %v114_v18 = vld [vmem:[#allocation5 + $0xd8] sm:$0xff]  ;;  %v129_v21 = vld [vmem:[#allocation5 + $0x150] sm:$0xff] }
  0x12   :  { %v147_v15 = vld [vmem:[#allocation5 + $0x1e0] sm:$0xff]  ;;  %237 = vmatpush.msra.mxu1 %v116_v10  ;;  %218 = vmatpush.msra.mxu0 %v99_v11  ;;  %v146_v19 = vld [vmem:[#allocation5 + $0x1d8] sm:$0xff]  ;;  %v113_v22 = vld [vmem:[#allocation5 + $0xd0] sm:$0xff] }
  0x13   :  { %277 = vmatpush.msra.mxu3 %v148_v13  ;;  %258 = vmatpush.msra.mxu2 %v131_v12  ;;  %v145_v23 = vld [vmem:[#allocation5 + $0x1d0] sm:$0xff]  ;;  %v96_v24 = vld [vmem:[#allocation5 + $0x48] sm:$0xff]  ;;  %v95_v28 = vld [vmem:[#allocation5 + $0x40] sm:$0xff] }
  0x14   :  { %238 = vmatpush.msra.mxu1 %v115_v14  ;;  %219 = vmatpush.msra.mxu0 %v98_v16  ;;  %v128_v25 = vld [vmem:[#allocation5 + $0x148] sm:$0xff]  ;;  %v127_v29 = vld [vmem:[#allocation5 + $0x140] sm:$0xff]  ;;  %v94_v32 = vld [vmem:[#allocation5 + $0x38] sm:$0xff] }
  0x15   :  { %278 = vmatpush.msra.mxu3 %v147_v15  ;;  %259 = vmatpush.msra.mxu2 %v130_v17  ;;  %v112_v26 = vld [vmem:[#allocation5 + $0xc8] sm:$0xff]  ;;  %v111_v30 = vld [vmem:[#allocation5 + $0xc0] sm:$0xff]  ;;  %v126_v33 = vld [vmem:[#allocation5 + $0x138] sm:$0xff] }
  0x16   :  { %239 = vmatpush.msra.mxu1 %v114_v18  ;;  %220 = vmatpush.msra.mxu0 %v97_v20  ;;  %v144_v27 = vld [vmem:[#allocation5 + $0x1c8] sm:$0xff]  ;;  %v143_v31 = vld [vmem:[#allocation5 + $0x1c0] sm:$0xff]  ;;  %v110_v34 = vld [vmem:[#allocation5 + $0xb8] sm:$0xff] }
  0x17   :  { %279 = vmatpush.msra.mxu3 %v146_v19  ;;  %260 = vmatpush.msra.mxu2 %v129_v21  ;;  %v142_v35 = vld [vmem:[#allocation5 + $0x1b8] sm:$0xff]  ;;  %v93_v36 = vld [vmem:[#allocation5 + $0x30] sm:$0xff]  ;;  %v92_v38 = vld [vmem:[#allocation5 + $0x28] sm:$0xff] }
  0x18   :  { %240 = vmatpush.msra.mxu1 %v113_v22  ;;  %221 = vmatpush.msra.mxu0 %v96_v24  ;;  %v125_v37 = vld [vmem:[#allocation5 + $0x130] sm:$0xff]  ;;  %v124_v41 = vld [vmem:[#allocation5 + $0x128] sm:$0xff]  ;;  %v91_v42 = vld [vmem:[#allocation5 + $0x20] sm:$0xff] }
  0x19   :  { %280 = vmatpush.msra.mxu3 %v145_v23  ;;  %261 = vmatpush.msra.mxu2 %v128_v25  ;;  %v109_v39 = vld [vmem:[#allocation5 + $0xb0] sm:$0xff]  ;;  %v108_v43 = vld [vmem:[#allocation5 + $0xa8] sm:$0xff]  ;;  %v535_v45 = vld [vmem:[#allocation2] sm:$0xff] }
  0x1a   :  { %241 = vmatpush.msra.mxu1 %v112_v26  ;;  %222 = vmatpush.msra.mxu0 %v95_v28  ;;  %v141_v40 = vld [vmem:[#allocation5 + $0x1b0] sm:$0xff]  ;;  %v140_v44 = vld [vmem:[#allocation5 + $0x1a8] sm:$0xff]  ;;  %v123_v47 = vld [vmem:[#allocation5 + $0x120] sm:$0xff]  ;;  %v56_v50 = vmul.f32 %v535_v45, %v535_v45 }
  0x1b   :  { %281 = vmatpush.msra.mxu3 %v144_v27  ;;  %262 = vmatpush.msra.mxu2 %v127_v29  ;;  %v537_v46 = vld [vmem:[#allocation2 + $0x8] sm:$0xff]  ;;  %v539_v48 = vld [vmem:[#allocation2 + $0x10] sm:$0xff]  ;;  %v541_v49 = vld [vmem:[#allocation2 + $0x18] sm:$0xff] }
  0x1c   :  { %242 = vmatpush.msra.mxu1 %v111_v30  ;;  %223 = vmatpush.msra.mxu0 %v94_v32  ;;  %v57_v51 = vmul.f32 %v537_v46, %v537_v46  ;;  %v107_v52 = vld [vmem:[#allocation5 + $0xa0] sm:$0xff]  ;;  %v58_v54 = vmul.f32 %v539_v48, %v539_v48  ;;  %v90_v55 = vld [vmem:[#allocation5 + $0x18] sm:$0xff]  ;;  %v59_v60 = vmul.f32 %v541_v49, %v541_v49  ;;  %v89_v62 = vld [vmem:[#allocation5 + $0x10] sm:$0xff] }
  0x1d   :  { %282 = vmatpush.msra.mxu3 %v143_v31  ;;  %263 = vmatpush.msra.mxu2 %v126_v33  ;;  %v139_v53 = vld [vmem:[#allocation5 + $0x1a0] sm:$0xff]  ;;  %v122_v56 = vld [vmem:[#allocation5 + $0x118] sm:$0xff]  ;;  %v121_v63 = vld [vmem:[#allocation5 + $0x110] sm:$0xff] }
  0x1e   :  { %243 = vmatpush.msra.mxu1 %v110_v34  ;;  %224 = vmatpush.msra.mxu0 %v93_v36  ;;  %v549_v57 = vld [vmem:[#allocation2 + $0x20] sm:$0xff]  ;;  %v106_v58 = vld [vmem:[#allocation5 + $0x98] sm:$0xff]  ;;  %v64_v61 = vadd.f32 %v57_v51, %v56_v50  ;;  %v553_v0 = vld [vmem:[#allocation2 + $0x28] sm:$0xff] }
  0x1f   :  { %283 = vmatpush.msra.mxu3 %v142_v35  ;;  %264 = vmatpush.msra.mxu2 %v125_v37  ;;  %v138_v59 = vld [vmem:[#allocation5 + $0x198] sm:$0xff]  ;;  %v105_v1 = vld [vmem:[#allocation5 + $0x90] sm:$0xff]  ;;  %v60_v3 = vmul.f32 %v549_v57, %v549_v57  ;;  %v88_v5 = vld [vmem:[#allocation5 + $0x8] sm:$0xff]  ;;  %v61_v8 = vmul.f32 %v553_v0, %v553_v0 }
  0x20   :  { %244 = vmatpush.msra.mxu1 %v109_v39  ;;  %225 = vmatpush.msra.mxu0 %v92_v38  ;;  %v137_v2 = vld [vmem:[#allocation5 + $0x190] sm:$0xff]  ;;  %v65_v4 = vadd.f32 %v64_v61, %v58_v54  ;;  %v120_v6 = vld [vmem:[#allocation5 + $0x108] sm:$0xff]  ;;  %v561_v12 = vld [vmem:[#allocation2 + $0x38] sm:$0xff] }
  0x21   :  { %284 = vmatpush.msra.mxu3 %v141_v40  ;;  %265 = vmatpush.msra.mxu2 %v124_v41  ;;  %v557_v7 = vld [vmem:[#allocation2 + $0x30] sm:$0xff]  ;;  %v104_v10 = vld [vmem:[#allocation5 + $0x88] sm:$0xff]  ;;  %v87_v13 = vld [vmem:[#allocation5] sm:$0xff]  ;;  %v63_v21 = vmul.f32 %v561_v12, %v561_v12 }
  0x22   :  { %245 = vmatpush.msra.mxu1 %v108_v43  ;;  %226 = vmatpush.msra.mxu0 %v91_v42  ;;  %v66_v9 = vadd.f32 %v65_v4, %v59_v60  ;;  %v136_v11 = vld [vmem:[#allocation5 + $0x188] sm:$0xff]  ;;  %v119_v14 = vld [vmem:[#allocation5 + $0x100] sm:$0xff]  ;;  %v62_v15 = vmul.f32 %v557_v7, %v557_v7  ;;  %v166_v17 = vld [vmem:[#allocation5 + $0x278] sm:$0xff] }
  0x23   :  { %285 = vmatpush.msra.mxu3 %v140_v44  ;;  %266 = vmatpush.msra.mxu2 %v123_v47  ;;  %v198_v18 = vld [vmem:[#allocation5 + $0x378] sm:$0xff]  ;;  %v103_v19 = vld [vmem:[#allocation5 + $0x80] sm:$0xff]  ;;  %v165_v23 = vld [vmem:[#allocation5 + $0x270] sm:$0xff] }
  0x24   :  { %246 = vmatpush.msra.mxu1 %v107_v52  ;;  %227 = vmatpush.msra.mxu0 %v90_v55  ;;  %v67_v16 = vadd.f32 %v66_v9, %v60_v3  ;;  %v135_v20 = vld [vmem:[#allocation5 + $0x180] sm:$0xff]  ;;  %v182_v24 = vld [vmem:[#allocation5 + $0x2f8] sm:$0xff]  ;;  %v197_v25 = vld [vmem:[#allocation5 + $0x370] sm:$0xff] }
  0x25   :  { %286 = vmatpush.msra.mxu3 %v139_v53  ;;  %267 = vmatpush.msra.mxu2 %v122_v56  ;;  %v214_v26 = vld [vmem:[#allocation5 + $0x3f8] sm:$0xff]  ;;  %v164_v28 = vld [vmem:[#allocation5 + $0x268] sm:$0xff]  ;;  %v181_v29 = vld [vmem:[#allocation5 + $0x2f0] sm:$0xff] }
  0x26   :  { %247 = vmatpush.msra.mxu1 %v106_v58  ;;  %228 = vmatpush.msra.mxu0 %v89_v62  ;;  %v68_v22 = vadd.f32 %v67_v16, %v61_v8  ;;  %v196_v30 = vld [vmem:[#allocation5 + $0x368] sm:$0xff]  ;;  %v213_v32 = vld [vmem:[#allocation5 + $0x3f0] sm:$0xff]  ;;  %v163_v33 = vld [vmem:[#allocation5 + $0x260] sm:$0xff] }
  0x27   :  { %287 = vmatpush.msra.mxu3 %v138_v59  ;;  %268 = vmatpush.msra.mxu2 %v121_v63  ;;  %v180_v34 = vld [vmem:[#allocation5 + $0x2e8] sm:$0xff]  ;;  %v195_v35 = vld [vmem:[#allocation5 + $0x360] sm:$0xff]  ;;  %v162_v37 = vld [vmem:[#allocation5 + $0x258] sm:$0xff] }
  0x28   :  { %248 = vmatpush.msra.mxu1 %v105_v1  ;;  %229 = vmatpush.msra.mxu0 %v88_v5  ;;  %v69_v27 = vadd.f32 %v68_v22, %v62_v15  ;;  %v212_v36 = vld [vmem:[#allocation5 + $0x3e8] sm:$0xff]  ;;  %v179_v38 = vld [vmem:[#allocation5 + $0x2e0] sm:$0xff]  ;;  %v194_v39 = vld [vmem:[#allocation5 + $0x358] sm:$0xff] }
  0x29   :  { %288 = vmatpush.msra.mxu3 %v137_v2  ;;  %269 = vmatpush.msra.mxu2 %v120_v6  ;;  %v211_v40 = vld [vmem:[#allocation5 + $0x3e0] sm:$0xff]  ;;  %v161_v41 = vld [vmem:[#allocation5 + $0x250] sm:$0xff]  ;;  %v178_v42 = vld [vmem:[#allocation5 + $0x2d8] sm:$0xff] }
  0x2a   :  { %249 = vmatpush.msra.mxu1 %v104_v10  ;;  %230 = vmatpush.msra.mxu0 %v87_v13  ;;  %v70_v31 = vadd.f32 %v69_v27, %v63_v21  ;;  %v193_v43 = vld [vmem:[#allocation5 + $0x350] sm:$0xff]  ;;  %v210_v44 = vld [vmem:[#allocation5 + $0x3d8] sm:$0xff]  ;;  %v160_v47 = vld [vmem:[#allocation5 + $0x248] sm:$0xff] }
  0x2b   :  { %289 = vmatpush.msra.mxu3 %v136_v11  ;;  %270 = vmatpush.msra.mxu2 %v119_v14  ;;  %v177_v50 = vld [vmem:[#allocation5 + $0x2d0] sm:$0xff]  ;;  %v192_v51 = vld [vmem:[#allocation5 + $0x348] sm:$0xff]  ;;  %v159_v53 = vld [vmem:[#allocation5 + $0x240] sm:$0xff] }
  0x2c   :  { %295 = vmatpush.msrb.mxu0 %v166_v17  ;;  %250 = vmatpush.msra.mxu1 %v103_v19  ;;  %v209_v52 = vld [vmem:[#allocation5 + $0x3d0] sm:$0xff]  ;;  %v176_v54 = vld [vmem:[#allocation5 + $0x2c8] sm:$0xff]  ;;  %v191_v55 = vld [vmem:[#allocation5 + $0x340] sm:$0xff] }
  0x2d   :  { %335 = vmatpush.msrb.mxu2 %v198_v18  ;;  %290 = vmatpush.msra.mxu3 %v135_v20  ;;  %v208_v56 = vld [vmem:[#allocation5 + $0x3c8] sm:$0xff]  ;;  %v158_v58 = vld [vmem:[#allocation5 + $0x238] sm:$0xff]  ;;  %v175_v59 = vld [vmem:[#allocation5 + $0x2c0] sm:$0xff] }
  0x2e   :  { %296 = vmatpush.msrb.mxu0 %v165_v23  ;;  %315 = vmatpush.msrb.mxu1 %v182_v24  ;;  %v190_v60 = vld [vmem:[#allocation5 + $0x338] sm:$0xff]  ;;  %v207_v61 = vld [vmem:[#allocation5 + $0x3c0] sm:$0xff]  ;;  %v157_v62 = vld [vmem:[#allocation5 + $0x230] sm:$0xff] }
  0x2f   :  { %336 = vmatpush.msrb.mxu2 %v197_v25  ;;  %355 = vmatpush.msrb.mxu3 %v214_v26  ;;  %v174_v63 = vld [vmem:[#allocation5 + $0x2b8] sm:$0xff]  ;;  %v189_v1 = vld [vmem:[#allocation5 + $0x330] sm:$0xff]  ;;  %v156_v3 = vld [vmem:[#allocation5 + $0x228] sm:$0xff] }
  0x30   :  { %297 = vmatpush.msrb.mxu0 %v164_v28  ;;  %316 = vmatpush.msrb.mxu1 %v181_v29  ;;  %v206_v2 = vld [vmem:[#allocation5 + $0x3b8] sm:$0xff]  ;;  %v173_v4 = vld [vmem:[#allocation5 + $0x2b0] sm:$0xff]  ;;  %v188_v5 = vld [vmem:[#allocation5 + $0x328] sm:$0xff] }
  0x31   :  { %71 = vadd.xlane.f32.xlu0 %v70_v31  ;;  %337 = vmatpush.msrb.mxu2 %v196_v30  ;;  %v205_v6 = vld [vmem:[#allocation5 + $0x3b0] sm:$0xff]  ;;  %v155_v8 = vld [vmem:[#allocation5 + $0x220] sm:$0xff]  ;;  %v172_v9 = vld [vmem:[#allocation5 + $0x2a8] sm:$0xff] }
  0x32   :  { %356 = vmatpush.msrb.mxu3 %v213_v32  ;;  %298 = vmatpush.msrb.mxu0 %v163_v33  ;;  %v187_v10 = vld [vmem:[#allocation5 + $0x320] sm:$0xff]  ;;  %v204_v11 = vld [vmem:[#allocation5 + $0x3a8] sm:$0xff]  ;;  %v154_v13 = vld [vmem:[#allocation5 + $0x218] sm:$0xff] }
  0x33   :  { %317 = vmatpush.msrb.mxu1 %v180_v34  ;;  %338 = vmatpush.msrb.mxu2 %v195_v35  ;;  %v171_v14 = vld [vmem:[#allocation5 + $0x2a0] sm:$0xff]  ;;  %v186_v15 = vld [vmem:[#allocation5 + $0x318] sm:$0xff]  ;;  %v153_v17 = vld [vmem:[#allocation5 + $0x210] sm:$0xff] }
  0x34   :  { %357 = vmatpush.msrb.mxu3 %v212_v36  ;;  %299 = vmatpush.msrb.mxu0 %v162_v37  ;;  %v203_v16 = vld [vmem:[#allocation5 + $0x3a0] sm:$0xff]  ;;  %v170_v18 = vld [vmem:[#allocation5 + $0x298] sm:$0xff]  ;;  %v185_v19 = vld [vmem:[#allocation5 + $0x310] sm:$0xff] }
  0x35   :  { %318 = vmatpush.msrb.mxu1 %v179_v38  ;;  %339 = vmatpush.msrb.mxu2 %v194_v39  ;;  %v152_v20 = vld [vmem:[#allocation5 + $0x208] sm:$0xff]  ;;  %v169_v21 = vld [vmem:[#allocation5 + $0x290] sm:$0xff]  ;;  %v183_v24 = vld [vmem:[#allocation5 + $0x300] sm:$0xff] }
  0x36   :  { %358 = vmatpush.msrb.mxu3 %v211_v40  ;;  %300 = vmatpush.msrb.mxu0 %v161_v41  ;;  %v184_v22 = vld [vmem:[#allocation5 + $0x308] sm:$0xff]  ;;  %v201_v23 = vld [vmem:[#allocation5 + $0x390] sm:$0xff]  ;;  %v167_v26 = vld [vmem:[#allocation5 + $0x280] sm:$0xff] }
  0x37   :  { %319 = vmatpush.msrb.mxu1 %v178_v42  ;;  %340 = vmatpush.msrb.mxu2 %v193_v43  ;;  %v200_v25 = vld [vmem:[#allocation5 + $0x388] sm:$0xff]  ;;  %v375_v42 = vld [vmem:[%s590_s3] sm:$0x1] }
  0x38   :  { %359 = vmatpush.msrb.mxu3 %v210_v44  ;;  %301 = vmatpush.msrb.mxu0 %v160_v47  ;;  %v415_v47 = vld [vmem:[%s590_s3] ss:$0 sm:$0xff]  ;;  %s399_s3 = sshll.u32 %s591_s4, 4  ;;  %s400_s3 = int_to_ptr.hbm [resolvable:$true] %s399_s3 }
  0x39   :  { %320 = vmatpush.msrb.mxu1 %v177_v50  ;;  %341 = vmatpush.msrb.mxu2 %v192_v51  ;;  %v380_v50 = vsub.f32 1.0, %v375_v42 }
  0x3a   :  { %360 = vmatpush.msrb.mxu3 %v209_v52  ;;  %302 = vmatpush.msrb.mxu0 %v159_v53 }
  0x3b   :  { %321 = vmatpush.msrb.mxu1 %v176_v54  ;;  %342 = vmatpush.msrb.mxu2 %v191_v55  ;;  %v382_v55 = vperm.slane %v380_v50, 0 }
  0x3c   :  { %361 = vmatpush.msrb.mxu3 %v208_v56  ;;  %303 = vmatpush.msrb.mxu0 %v158_v58 }
  0x3d   :  { %322 = vmatpush.msrb.mxu1 %v175_v59  ;;  %343 = vmatpush.msrb.mxu2 %v190_v60 }
  0x3e   :  { %362 = vmatpush.msrb.mxu3 %v207_v61  ;;  %304 = vmatpush.msrb.mxu0 %v157_v62  ;;  %v416_v62 = vld [vmem:[%s589_s2] ss:$0 sm:$0xff] }
  0x3f   :  { %323 = vmatpush.msrb.mxu1 %v174_v63  ;;  %344 = vmatpush.msrb.mxu2 %v189_v1 }
  0x40   :  { %363 = vmatpush.msrb.mxu3 %v206_v2  ;;  %305 = vmatpush.msrb.mxu0 %v156_v3 }
  0x41   :  { %324 = vmatpush.msrb.mxu1 %v173_v4  ;;  %345 = vmatpush.msrb.mxu2 %v188_v5 }
  0x42   :  { %364 = vmatpush.msrb.mxu3 %v205_v6  ;;  %271 = vmatmul.f32.vlgmr.msra.gmra.mxu2 %v539_v48  ;;  %v202_v48 = vld [vmem:[#allocation5 + $0x398] sm:$0xff] }
  0x43   :  { %306 = vmatpush.msrb.mxu0 %v155_v8  ;;  %325 = vmatpush.msrb.mxu1 %v172_v9 }
  0x44   :  { %346 = vmatpush.msrb.mxu2 %v187_v10  ;;  %365 = vmatpush.msrb.mxu3 %v204_v11 }
  0x45   :  { %231 = vmatmul.f32.vlgmr.msra.gmra.mxu0 %v535_v45  ;;  %291 = vmatmul.f32.vlgmr.msra.gmra.mxu3 %v541_v49  ;;  %v151_v45 = vld [vmem:[#allocation5 + $0x200] sm:$0xff]  ;;  %v168_v49 = vld [vmem:[#allocation5 + $0x288] sm:$0xff] }
  0x46   :  { %307 = vmatpush.msrb.mxu0 %v154_v13  ;;  %326 = vmatpush.msrb.mxu1 %v171_v14 }
  0x47   :  { %347 = vmatpush.msrb.mxu2 %v186_v15  ;;  %366 = vmatpush.msrb.mxu3 %v203_v16 }
  0x48   :  { %251 = vmatmul.f32.vlgmr.msra.gmra.mxu1 %v537_v46  ;;  %308 = vmatpush.msrb.mxu0 %v153_v17  ;;  %v199_v46 = vld [vmem:[#allocation5 + $0x380] sm:$0xff] }
  0x49   :  { %327 = vmatpush.msrb.mxu1 %v170_v18  ;;  %348 = vmatpush.msrb.mxu2 %v185_v19 }
  0x4a   :  { %367 = vmatpush.msrb.mxu3 %v202_v48  ;;  %309 = vmatpush.msrb.mxu0 %v152_v20 }
  0x4b   :  { %328 = vmatpush.msrb.mxu1 %v169_v21  ;;  %349 = vmatpush.msrb.mxu2 %v184_v22 }
  0x4c   :  { %368 = vmatpush.msrb.mxu3 %v201_v23  ;;  %310 = vmatpush.msrb.mxu0 %v151_v45 }
  0x4d   :  { %329 = vmatpush.msrb.mxu1 %v168_v49  ;;  %350 = vmatpush.msrb.mxu2 %v183_v24 }
  0x4e   :  { %369 = vmatpush.msrb.mxu3 %v200_v25  ;;  %311 = vmatmul.f32.vlgmr.msrb.gmra.mxu0 %v549_v57 }
  0x4f   :  { %351 = vmatmul.f32.vlgmr.msrb.gmra.mxu2 %v557_v7  ;;  %330 = vmatpush.msrb.mxu1 %v167_v26 }
  0x50   :  { %370 = vmatpush.msrb.mxu3 %v199_v46  ;;  %331 = vmatmul.f32.vlgmr.msrb.gmra.mxu1 %v553_v0 }
  0x51   :  { %371 = vmatmul.f32.vlgmr.msrb.gmra.mxu3 %v561_v12 }
  0xa4   :  { %v72_v27 = vpop.xlane.xlu0 %71 }
  0xa5   :  { %417 = vrsqrt.f32 %v72_v27  ;;  %vm80_vm0 = vcmp.eq.f32.partialorder %v72_v27, inf  ;;  %v83_v35 = vand.u32 2147483648, %v72_v27  ;;  %vm82_vm1 = vcmp.eq.f32.partialorder %v72_v27, 0.0 }
  0xab   :  { %v418_v28 = vpop.eup %417 }
  0xac   :  { %v74_v29 = vmul.f32 %v418_v28, %v72_v27 }
  0xae   :  { %v75_v30 = vmul.f32 %v418_v28, %v74_v29 }
  0xb0   :  { %v76_v31 = vmul.f32 0.5, %v75_v30 }
  0xb2   :  { %v77_v32 = vsub.f32 1.5, %v76_v31 }
  0xb4   :  { %v78_v33 = vmul.f32 %v418_v28, %v77_v32 }
  0xb6   :  { %v79_v34 = vmul.f32 %v78_v33, %v72_v27 }
  0xb8   :  { %v81_v57 = vsel %vm80_vm0, %v72_v27, %v79_v34 }
  0xb9   :  { %v84_v7 = vsel %vm82_vm1, %v83_v35, %v81_v57 }
  0xba   :  { %v85_v37 = vadd.f32 1e-05, %v84_v7 }
  0xbc   :  { %419 = vrcp.f32 %v85_v37 }
  0xc2   :  { %v232_v36 = vpop.f32.mrf.mxu0  ;;  %v420_v51 = vpop.eup %419 }
  0xc3   :  { %v379_v54 = vmul.f32 %v420_v51, %v415_v47 }
  0xc5   :  { %v252_v38 = vpop.f32.mrf.mxu1  ;;  %v272_v0 = vpop.f32.mrf.mxu2  ;;  %v384_v61 = vadd.f32 %v382_v55, %v379_v54 }
  0xc6   :  { %v253_v39 = vadd.f32 %v252_v38, %v232_v36 }
  0xc8   :  { %v273_v12 = vadd.f32 %v272_v0, %v253_v39  ;;  %v292_v40 = vpop.f32.mrf.mxu3 }
  0xca   :  { %v293_v41 = vadd.f32 %v292_v40, %v273_v12 }
  0xcb   :  { %v312_v43 = vpop.f32.mrf.mxu0 }
  0xcc   :  { %v313_v44 = vadd.f32 %v312_v43, %v293_v41 }
  0xcd   :  { %v332_v52 = vpop.f32.mrf.mxu1 }
  0xce   :  { %v333_v53 = vadd.f32 %v332_v52, %v313_v44 }
  0xd2   :  { %v352_v56 = vpop.f32.mrf.mxu2 }
  0xd3   :  { %v353_v58 = vadd.f32 %v352_v56, %v333_v53 }
  0xd4   :  { %v372_v59 = vpop.f32.mrf.mxu3 }
  0xd5   :  { %v373_v60 = vadd.f32 %v372_v59, %v353_v58 }
  0xd7   :  { %v385_v63 = vmul.f32 %v384_v61, %v373_v60 }
  0xd9   :  { %v390_v1 = vadd.f32 %v416_v62, %v385_v63 }
  0xdb   :  { %391 = vst [vmem:[#allocation7] sm:$0xff] %v390_v1 }
  0xdc   :  { %402 = dma.vmem_to_hbm [thread:$0]  %s398_s6, 128, %s400_s3, [#allocation4]  }
  0xdd   :  { %497 = dma.done.wait [#allocation4], 128  }
  0xde   :  { %498 = vsyncadd [#allocation4], 4294967168 }
  0xdf   :  { %407 = vsyncpa [#allocation3], 1 }
  0xe0   :  { %408 = vsyncpa [#allocation6], 1 }
  0xe1   :  { %409 = vsyncpa [#allocation4], 1 }

// kernel: tpu_custom_call.1
= control target key start
LH: loop header
LB: loop body
LE: loop exit
PB: predicated region body
PF: predicated region fallthrough
CT: control target
= control target key end

     0   :  { %9 = vsyncpa [#allocation3], 0  ;;  %s587_s0 = inlined_call_operand.hbm [shape: f32[8,1024], index: 0, kind: input, shape index: {}]   ;;  %s588_s1 = inlined_call_operand.hbm [shape: f32[1024,128], index: 1, kind: input, shape index: {}]   ;;  %s589_s2 = inlined_call_operand.vmem [shape: f32[1,128], index: 2, kind: input, shape index: {}]   ;;  %s590_s3 = inlined_call_operand.vmem [shape: f32[1,128], index: 3, kind: input, shape index: {}]   ;;  %s591_s4 = inlined_call_operand.hbm [shape: f32[8,128], index: 4, kind: output, shape index: {}]  }
   0x1   :  { %10 = vsyncpa [#allocation6], 0 }
   0x2   :  { %11 = vsyncpa [#allocation4], 0  ;;  %s17_s17 = sshll.u32 %s587_s0, 4  ;;  %s499_s18 = smov [#allocation2]   ;;  %s18_s17 = int_to_ptr.hbm [resolvable:$true] %s17_s17 }
   0x3   :  { %s19_s19 = sshll.u32 %s499_s18, 4  ;;  %s27_s22 = sshll.u32 %s588_s1, 4  ;;  %s20_s19 = int_to_ptr.vmem [resolvable:$true] %s19_s19  ;;  %s28_s22 = int_to_ptr.hbm [resolvable:$true] %s27_s22 }
   0x4   :  { %22 = dma.hbm_to_vmem [thread:$0]  %s18_s17, 1024, %s20_s19, [#allocation3]  }
   0x5   :  { %s500_s23 = smov [#allocation5]   ;;  %s501_s25 = smov 128  }
   0x6   :  { %s29_s24 = sshll.u32 %s500_s23, 4  ;;  %s502_s26 = smov 8   ;;  %s30_s24 = int_to_ptr.vmem [resolvable:$true] %s29_s24 }
   0x7   :  { %35 = dma.hbm_to_vmem [thread:$0]  %s28_s22, 16384, %s30_s24, [#allocation6], %s501_s25, %s501_s25, %s502_s26  }
   0x8   :  { %493 = dma.done.wait [#allocation3], 1024  }
   0x9   :  { %494 = vsyncadd [#allocation3], 4294966272 }
   0xa   :  { %495 = dma.done.wait [#allocation6], 16384  }
   0xb   :  { %496 = vsyncadd [#allocation6], 4294950912  ;;  %v102_v0 = vld [vmem:[#allocation5 + $0x78] sm:$0xff]  ;;  %v101_v2 = vld [vmem:[#allocation5 + $0x70] sm:$0xff]  ;;  %s503_s5 = smov [#allocation7]  }
   0xc   :  { %v134_v1 = vld [vmem:[#allocation5 + $0x178] sm:$0xff]  ;;  %215 = vmatpush.msra.mxu0 %v102_v0  ;;  %v133_v4 = vld [vmem:[#allocation5 + $0x170] sm:$0xff]  ;;  %v100_v6 = vld [vmem:[#allocation5 + $0x68] sm:$0xff]  ;;  %s397_s6 = sshll.u32 %s503_s5, 4  ;;  %s398_s6 = int_to_ptr.vmem [resolvable:$true] %s397_s6 }
   0xd   :  { %255 = vmatpush.msra.mxu2 %v134_v1  ;;  %v118_v3 = vld [vmem:[#allocation5 + $0xf8] sm:$0xff]  ;;  %v117_v7 = vld [vmem:[#allocation5 + $0xf0] sm:$0xff]  ;;  %v132_v8 = vld [vmem:[#allocation5 + $0x168] sm:$0xff] }
   0xe   :  { %v150_v5 = vld [vmem:[#allocation5 + $0x1f8] sm:$0xff]  ;;  %235 = vmatpush.msra.mxu1 %v118_v3  ;;  %216 = vmatpush.msra.mxu0 %v101_v2  ;;  %v149_v9 = vld [vmem:[#allocation5 + $0x1f0] sm:$0xff]  ;;  %v116_v10 = vld [vmem:[#allocation5 + $0xe8] sm:$0xff] }
   0xf   :  { %275 = vmatpush.msra.mxu3 %v150_v5  ;;  %256 = vmatpush.msra.mxu2 %v133_v4  ;;  %v99_v11 = vld [vmem:[#allocation5 + $0x60] sm:$0xff]  ;;  %v148_v13 = vld [vmem:[#allocation5 + $0x1e8] sm:$0xff]  ;;  %v98_v16 = vld [vmem:[#allocation5 + $0x58] sm:$0xff] }
  0x10   :  { %236 = vmatpush.msra.mxu1 %v117_v7  ;;  %v131_v12 = vld [vmem:[#allocation5 + $0x160] sm:$0xff]  ;;  %217 = vmatpush.msra.mxu0 %v100_v6  ;;  %v130_v17 = vld [vmem:[#allocation5 + $0x158] sm:$0xff]  ;;  %v97_v20 = vld [vmem:[#allocation5 + $0x50] sm:$0xff] }
  0x11   :  { %276 = vmatpush.msra.mxu3 %v149_v9  ;;  %257 = vmatpush.msra.mxu2 %v132_v8  ;;  %v115_v14 = vld [vmem:[#allocation5 + $0xe0] sm:$0xff]  ;;  %v114_v18 = vld [vmem:[#allocation5 + $0xd8] sm:$0xff]  ;;  %v129_v21 = vld [vmem:[#allocation5 + $0x150] sm:$0xff] }
  0x12   :  { %v147_v15 = vld [vmem:[#allocation5 + $0x1e0] sm:$0xff]  ;;  %237 = vmatpush.msra.mxu1 %v116_v10  ;;  %218 = vmatpush.msra.mxu0 %v99_v11  ;;  %v146_v19 = vld [vmem:[#allocation5 + $0x1d8] sm:$0xff]  ;;  %v113_v22 = vld [vmem:[#allocation5 + $0xd0] sm:$0xff] }
  0x13   :  { %277 = vmatpush.msra.mxu3 %v148_v13  ;;  %258 = vmatpush.msra.mxu2 %v131_v12  ;;  %v145_v23 = vld [vmem:[#allocation5 + $0x1d0] sm:$0xff]  ;;  %v96_v24 = vld [vmem:[#allocation5 + $0x48] sm:$0xff]  ;;  %v95_v28 = vld [vmem:[#allocation5 + $0x40] sm:$0xff] }
  0x14   :  { %238 = vmatpush.msra.mxu1 %v115_v14  ;;  %219 = vmatpush.msra.mxu0 %v98_v16  ;;  %v128_v25 = vld [vmem:[#allocation5 + $0x148] sm:$0xff]  ;;  %v127_v29 = vld [vmem:[#allocation5 + $0x140] sm:$0xff]  ;;  %v94_v32 = vld [vmem:[#allocation5 + $0x38] sm:$0xff] }
  0x15   :  { %278 = vmatpush.msra.mxu3 %v147_v15  ;;  %259 = vmatpush.msra.mxu2 %v130_v17  ;;  %v112_v26 = vld [vmem:[#allocation5 + $0xc8] sm:$0xff]  ;;  %v111_v30 = vld [vmem:[#allocation5 + $0xc0] sm:$0xff]  ;;  %v126_v33 = vld [vmem:[#allocation5 + $0x138] sm:$0xff] }
  0x16   :  { %239 = vmatpush.msra.mxu1 %v114_v18  ;;  %220 = vmatpush.msra.mxu0 %v97_v20  ;;  %v144_v27 = vld [vmem:[#allocation5 + $0x1c8] sm:$0xff]  ;;  %v143_v31 = vld [vmem:[#allocation5 + $0x1c0] sm:$0xff]  ;;  %v110_v34 = vld [vmem:[#allocation5 + $0xb8] sm:$0xff] }
  0x17   :  { %279 = vmatpush.msra.mxu3 %v146_v19  ;;  %260 = vmatpush.msra.mxu2 %v129_v21  ;;  %v142_v35 = vld [vmem:[#allocation5 + $0x1b8] sm:$0xff]  ;;  %v93_v36 = vld [vmem:[#allocation5 + $0x30] sm:$0xff]  ;;  %v92_v38 = vld [vmem:[#allocation5 + $0x28] sm:$0xff] }
  0x18   :  { %240 = vmatpush.msra.mxu1 %v113_v22  ;;  %221 = vmatpush.msra.mxu0 %v96_v24  ;;  %v125_v37 = vld [vmem:[#allocation5 + $0x130] sm:$0xff]  ;;  %v124_v41 = vld [vmem:[#allocation5 + $0x128] sm:$0xff]  ;;  %v91_v42 = vld [vmem:[#allocation5 + $0x20] sm:$0xff] }
  0x19   :  { %280 = vmatpush.msra.mxu3 %v145_v23  ;;  %261 = vmatpush.msra.mxu2 %v128_v25  ;;  %v109_v39 = vld [vmem:[#allocation5 + $0xb0] sm:$0xff]  ;;  %v108_v43 = vld [vmem:[#allocation5 + $0xa8] sm:$0xff]  ;;  %v535_v45 = vld [vmem:[#allocation2] sm:$0xff] }
  0x1a   :  { %241 = vmatpush.msra.mxu1 %v112_v26  ;;  %222 = vmatpush.msra.mxu0 %v95_v28  ;;  %v141_v40 = vld [vmem:[#allocation5 + $0x1b0] sm:$0xff]  ;;  %v140_v44 = vld [vmem:[#allocation5 + $0x1a8] sm:$0xff]  ;;  %v123_v47 = vld [vmem:[#allocation5 + $0x120] sm:$0xff]  ;;  %v56_v50 = vmul.f32 %v535_v45, %v535_v45 }
  0x1b   :  { %281 = vmatpush.msra.mxu3 %v144_v27  ;;  %262 = vmatpush.msra.mxu2 %v127_v29  ;;  %v537_v46 = vld [vmem:[#allocation2 + $0x8] sm:$0xff]  ;;  %v539_v48 = vld [vmem:[#allocation2 + $0x10] sm:$0xff]  ;;  %v541_v49 = vld [vmem:[#allocation2 + $0x18] sm:$0xff] }
  0x1c   :  { %242 = vmatpush.msra.mxu1 %v111_v30  ;;  %223 = vmatpush.msra.mxu0 %v94_v32  ;;  %v57_v51 = vmul.f32 %v537_v46, %v537_v46  ;;  %v107_v52 = vld [vmem:[#allocation5 + $0xa0] sm:$0xff]  ;;  %v58_v54 = vmul.f32 %v539_v48, %v539_v48  ;;  %v90_v55 = vld [vmem:[#allocation5 + $0x18] sm:$0xff]  ;;  %v59_v60 = vmul.f32 %v541_v49, %v541_v49  ;;  %v89_v62 = vld [vmem:[#allocation5 + $0x10] sm:$0xff] }
  0x1d   :  { %282 = vmatpush.msra.mxu3 %v143_v31  ;;  %263 = vmatpush.msra.mxu2 %v126_v33  ;;  %v139_v53 = vld [vmem:[#allocation5 + $0x1a0] sm:$0xff]  ;;  %v122_v56 = vld [vmem:[#allocation5 + $0x118] sm:$0xff]  ;;  %v121_v63 = vld [vmem:[#allocation5 + $0x110] sm:$0xff] }
  0x1e   :  { %243 = vmatpush.msra.mxu1 %v110_v34  ;;  %224 = vmatpush.msra.mxu0 %v93_v36  ;;  %v549_v57 = vld [vmem:[#allocation2 + $0x20] sm:$0xff]  ;;  %v106_v58 = vld [vmem:[#allocation5 + $0x98] sm:$0xff]  ;;  %v64_v61 = vadd.f32 %v57_v51, %v56_v50  ;;  %v553_v0 = vld [vmem:[#allocation2 + $0x28] sm:$0xff] }
  0x1f   :  { %283 = vmatpush.msra.mxu3 %v142_v35  ;;  %264 = vmatpush.msra.mxu2 %v125_v37  ;;  %v138_v59 = vld [vmem:[#allocation5 + $0x198] sm:$0xff]  ;;  %v105_v1 = vld [vmem:[#allocation5 + $0x90] sm:$0xff]  ;;  %v60_v3 = vmul.f32 %v549_v57, %v549_v57  ;;  %v88_v5 = vld [vmem:[#allocation5 + $0x8] sm:$0xff]  ;;  %v61_v8 = vmul.f32 %v553_v0, %v553_v0 }
  0x20   :  { %244 = vmatpush.msra.mxu1 %v109_v39  ;;  %225 = vmatpush.msra.mxu0 %v92_v38  ;;  %v137_v2 = vld [vmem:[#allocation5 + $0x190] sm:$0xff]  ;;  %v65_v4 = vadd.f32 %v64_v61, %v58_v54  ;;  %v120_v6 = vld [vmem:[#allocation5 + $0x108] sm:$0xff]  ;;  %v561_v12 = vld [vmem:[#allocation2 + $0x38] sm:$0xff] }
  0x21   :  { %284 = vmatpush.msra.mxu3 %v141_v40  ;;  %265 = vmatpush.msra.mxu2 %v124_v41  ;;  %v557_v7 = vld [vmem:[#allocation2 + $0x30] sm:$0xff]  ;;  %v104_v10 = vld [vmem:[#allocation5 + $0x88] sm:$0xff]  ;;  %v87_v13 = vld [vmem:[#allocation5] sm:$0xff]  ;;  %v63_v21 = vmul.f32 %v561_v12, %v561_v12 }
  0x22   :  { %245 = vmatpush.msra.mxu1 %v108_v43  ;;  %226 = vmatpush.msra.mxu0 %v91_v42  ;;  %v66_v9 = vadd.f32 %v65_v4, %v59_v60  ;;  %v136_v11 = vld [vmem:[#allocation5 + $0x188] sm:$0xff]  ;;  %v119_v14 = vld [vmem:[#allocation5 + $0x100] sm:$0xff]  ;;  %v62_v15 = vmul.f32 %v557_v7, %v557_v7  ;;  %v166_v17 = vld [vmem:[#allocation5 + $0x278] sm:$0xff] }
  0x23   :  { %285 = vmatpush.msra.mxu3 %v140_v44  ;;  %266 = vmatpush.msra.mxu2 %v123_v47  ;;  %v198_v18 = vld [vmem:[#allocation5 + $0x378] sm:$0xff]  ;;  %v103_v19 = vld [vmem:[#allocation5 + $0x80] sm:$0xff]  ;;  %v165_v23 = vld [vmem:[#allocation5 + $0x270] sm:$0xff] }
  0x24   :  { %246 = vmatpush.msra.mxu1 %v107_v52  ;;  %227 = vmatpush.msra.mxu0 %v90_v55  ;;  %v67_v16 = vadd.f32 %v66_v9, %v60_v3  ;;  %v135_v20 = vld [vmem:[#allocation5 + $0x180] sm:$0xff]  ;;  %v182_v24 = vld [vmem:[#allocation5 + $0x2f8] sm:$0xff]  ;;  %v197_v25 = vld [vmem:[#allocation5 + $0x370] sm:$0xff] }
  0x25   :  { %286 = vmatpush.msra.mxu3 %v139_v53  ;;  %267 = vmatpush.msra.mxu2 %v122_v56  ;;  %v214_v26 = vld [vmem:[#allocation5 + $0x3f8] sm:$0xff]  ;;  %v164_v28 = vld [vmem:[#allocation5 + $0x268] sm:$0xff]  ;;  %v181_v29 = vld [vmem:[#allocation5 + $0x2f0] sm:$0xff] }
  0x26   :  { %247 = vmatpush.msra.mxu1 %v106_v58  ;;  %228 = vmatpush.msra.mxu0 %v89_v62  ;;  %v68_v22 = vadd.f32 %v67_v16, %v61_v8  ;;  %v196_v30 = vld [vmem:[#allocation5 + $0x368] sm:$0xff]  ;;  %v213_v32 = vld [vmem:[#allocation5 + $0x3f0] sm:$0xff]  ;;  %v163_v33 = vld [vmem:[#allocation5 + $0x260] sm:$0xff] }
  0x27   :  { %287 = vmatpush.msra.mxu3 %v138_v59  ;;  %268 = vmatpush.msra.mxu2 %v121_v63  ;;  %v180_v34 = vld [vmem:[#allocation5 + $0x2e8] sm:$0xff]  ;;  %v195_v35 = vld [vmem:[#allocation5 + $0x360] sm:$0xff]  ;;  %v162_v37 = vld [vmem:[#allocation5 + $0x258] sm:$0xff] }
  0x28   :  { %248 = vmatpush.msra.mxu1 %v105_v1  ;;  %229 = vmatpush.msra.mxu0 %v88_v5  ;;  %v69_v27 = vadd.f32 %v68_v22, %v62_v15  ;;  %v212_v36 = vld [vmem:[#allocation5 + $0x3e8] sm:$0xff]  ;;  %v179_v38 = vld [vmem:[#allocation5 + $0x2e0] sm:$0xff]  ;;  %v194_v39 = vld [vmem:[#allocation5 + $0x358] sm:$0xff] }
  0x29   :  { %288 = vmatpush.msra.mxu3 %v137_v2  ;;  %269 = vmatpush.msra.mxu2 %v120_v6  ;;  %v211_v40 = vld [vmem:[#allocation5 + $0x3e0] sm:$0xff]  ;;  %v161_v41 = vld [vmem:[#allocation5 + $0x250] sm:$0xff]  ;;  %v178_v42 = vld [vmem:[#allocation5 + $0x2d8] sm:$0xff] }
  0x2a   :  { %249 = vmatpush.msra.mxu1 %v104_v10  ;;  %230 = vmatpush.msra.mxu0 %v87_v13  ;;  %v70_v31 = vadd.f32 %v69_v27, %v63_v21  ;;  %v193_v43 = vld [vmem:[#allocation5 + $0x350] sm:$0xff]  ;;  %v210_v44 = vld [vmem:[#allocation5 + $0x3d8] sm:$0xff]  ;;  %v160_v47 = vld [vmem:[#allocation5 + $0x248] sm:$0xff] }
  0x2b   :  { %289 = vmatpush.msra.mxu3 %v136_v11  ;;  %270 = vmatpush.msra.mxu2 %v119_v14  ;;  %v177_v50 = vld [vmem:[#allocation5 + $0x2d0] sm:$0xff]  ;;  %v192_v51 = vld [vmem:[#allocation5 + $0x348] sm:$0xff]  ;;  %v159_v53 = vld [vmem:[#allocation5 + $0x240] sm:$0xff] }
  0x2c   :  { %295 = vmatpush.msrb.mxu0 %v166_v17  ;;  %250 = vmatpush.msra.mxu1 %v103_v19  ;;  %v209_v52 = vld [vmem:[#allocation5 + $0x3d0] sm:$0xff]  ;;  %v176_v54 = vld [vmem:[#allocation5 + $0x2c8] sm:$0xff]  ;;  %v191_v55 = vld [vmem:[#allocation5 + $0x340] sm:$0xff] }
  0x2d   :  { %335 = vmatpush.msrb.mxu2 %v198_v18  ;;  %290 = vmatpush.msra.mxu3 %v135_v20  ;;  %v208_v56 = vld [vmem:[#allocation5 + $0x3c8] sm:$0xff]  ;;  %v158_v58 = vld [vmem:[#allocation5 + $0x238] sm:$0xff]  ;;  %v175_v59 = vld [vmem:[#allocation5 + $0x2c0] sm:$0xff] }
  0x2e   :  { %296 = vmatpush.msrb.mxu0 %v165_v23  ;;  %315 = vmatpush.msrb.mxu1 %v182_v24  ;;  %v190_v60 = vld [vmem:[#allocation5 + $0x338] sm:$0xff]  ;;  %v207_v61 = vld [vmem:[#allocation5 + $0x3c0] sm:$0xff]  ;;  %v157_v62 = vld [vmem:[#allocation5 + $0x230] sm:$0xff] }
  0x2f   :  { %336 = vmatpush.msrb.mxu2 %v197_v25  ;;  %355 = vmatpush.msrb.mxu3 %v214_v26  ;;  %v174_v63 = vld [vmem:[#allocation5 + $0x2b8] sm:$0xff]  ;;  %v189_v1 = vld [vmem:[#allocation5 + $0x330] sm:$0xff]  ;;  %v156_v3 = vld [vmem:[#allocation5 + $0x228] sm:$0xff] }
  0x30   :  { %297 = vmatpush.msrb.mxu0 %v164_v28  ;;  %316 = vmatpush.msrb.mxu1 %v181_v29  ;;  %v206_v2 = vld [vmem:[#allocation5 + $0x3b8] sm:$0xff]  ;;  %v173_v4 = vld [vmem:[#allocation5 + $0x2b0] sm:$0xff]  ;;  %v188_v5 = vld [vmem:[#allocation5 + $0x328] sm:$0xff] }
  0x31   :  { %71 = vadd.xlane.f32.xlu0 %v70_v31  ;;  %337 = vmatpush.msrb.mxu2 %v196_v30  ;;  %v205_v6 = vld [vmem:[#allocation5 + $0x3b0] sm:$0xff]  ;;  %v155_v8 = vld [vmem:[#allocation5 + $0x220] sm:$0xff]  ;;  %v172_v9 = vld [vmem:[#allocation5 + $0x2a8] sm:$0xff] }
  0x32   :  { %356 = vmatpush.msrb.mxu3 %v213_v32  ;;  %298 = vmatpush.msrb.mxu0 %v163_v33  ;;  %v187_v10 = vld [vmem:[#allocation5 + $0x320] sm:$0xff]  ;;  %v204_v11 = vld [vmem:[#allocation5 + $0x3a8] sm:$0xff]  ;;  %v154_v13 = vld [vmem:[#allocation5 + $0x218] sm:$0xff] }
  0x33   :  { %317 = vmatpush.msrb.mxu1 %v180_v34  ;;  %338 = vmatpush.msrb.mxu2 %v195_v35  ;;  %v171_v14 = vld [vmem:[#allocation5 + $0x2a0] sm:$0xff]  ;;  %v186_v15 = vld [vmem:[#allocation5 + $0x318] sm:$0xff]  ;;  %v153_v17 = vld [vmem:[#allocation5 + $0x210] sm:$0xff] }
  0x34   :  { %357 = vmatpush.msrb.mxu3 %v212_v36  ;;  %299 = vmatpush.msrb.mxu0 %v162_v37  ;;  %v203_v16 = vld [vmem:[#allocation5 + $0x3a0] sm:$0xff]  ;;  %v170_v18 = vld [vmem:[#allocation5 + $0x298] sm:$0xff]  ;;  %v185_v19 = vld [vmem:[#allocation5 + $0x310] sm:$0xff] }
  0x35   :  { %318 = vmatpush.msrb.mxu1 %v179_v38  ;;  %339 = vmatpush.msrb.mxu2 %v194_v39  ;;  %v152_v20 = vld [vmem:[#allocation5 + $0x208] sm:$0xff]  ;;  %v169_v21 = vld [vmem:[#allocation5 + $0x290] sm:$0xff]  ;;  %v183_v24 = vld [vmem:[#allocation5 + $0x300] sm:$0xff] }
  0x36   :  { %358 = vmatpush.msrb.mxu3 %v211_v40  ;;  %300 = vmatpush.msrb.mxu0 %v161_v41  ;;  %v184_v22 = vld [vmem:[#allocation5 + $0x308] sm:$0xff]  ;;  %v201_v23 = vld [vmem:[#allocation5 + $0x390] sm:$0xff]  ;;  %v167_v26 = vld [vmem:[#allocation5 + $0x280] sm:$0xff] }
  0x37   :  { %319 = vmatpush.msrb.mxu1 %v178_v42  ;;  %340 = vmatpush.msrb.mxu2 %v193_v43  ;;  %v200_v25 = vld [vmem:[#allocation5 + $0x388] sm:$0xff]  ;;  %v375_v42 = vld [vmem:[%s590_s3] sm:$0x1] }
  0x38   :  { %359 = vmatpush.msrb.mxu3 %v210_v44  ;;  %301 = vmatpush.msrb.mxu0 %v160_v47  ;;  %v415_v47 = vld [vmem:[%s590_s3] ss:$0 sm:$0xff]  ;;  %s399_s3 = sshll.u32 %s591_s4, 4  ;;  %s400_s3 = int_to_ptr.hbm [resolvable:$true] %s399_s3 }
  0x39   :  { %320 = vmatpush.msrb.mxu1 %v177_v50  ;;  %341 = vmatpush.msrb.mxu2 %v192_v51  ;;  %v380_v50 = vsub.f32 1.0, %v375_v42 }
  0x3a   :  { %360 = vmatpush.msrb.mxu3 %v209_v52  ;;  %302 = vmatpush.msrb.mxu0 %v159_v53 }
  0x3b   :  { %321 = vmatpush.msrb.mxu1 %v176_v54  ;;  %342 = vmatpush.msrb.mxu2 %v191_v55  ;;  %v382_v55 = vperm.slane %v380_v50, 0 }
  0x3c   :  { %361 = vmatpush.msrb.mxu3 %v208_v56  ;;  %303 = vmatpush.msrb.mxu0 %v158_v58 }
  0x3d   :  { %322 = vmatpush.msrb.mxu1 %v175_v59  ;;  %343 = vmatpush.msrb.mxu2 %v190_v60 }
  0x3e   :  { %362 = vmatpush.msrb.mxu3 %v207_v61  ;;  %304 = vmatpush.msrb.mxu0 %v157_v62  ;;  %v416_v62 = vld [vmem:[%s589_s2] ss:$0 sm:$0xff] }
  0x3f   :  { %323 = vmatpush.msrb.mxu1 %v174_v63  ;;  %344 = vmatpush.msrb.mxu2 %v189_v1 }
  0x40   :  { %363 = vmatpush.msrb.mxu3 %v206_v2  ;;  %305 = vmatpush.msrb.mxu0 %v156_v3 }
  0x41   :  { %324 = vmatpush.msrb.mxu1 %v173_v4  ;;  %345 = vmatpush.msrb.mxu2 %v188_v5 }
  0x42   :  { %364 = vmatpush.msrb.mxu3 %v205_v6  ;;  %271 = vmatmul.f32.vlgmr.msra.gmra.mxu2 %v539_v48  ;;  %v202_v48 = vld [vmem:[#allocation5 + $0x398] sm:$0xff] }
  0x43   :  { %306 = vmatpush.msrb.mxu0 %v155_v8  ;;  %325 = vmatpush.msrb.mxu1 %v172_v9 }
  0x44   :  { %346 = vmatpush.msrb.mxu2 %v187_v10  ;;  %365 = vmatpush.msrb.mxu3 %v204_v11 }
  0x45   :  { %231 = vmatmul.f32.vlgmr.msra.gmra.mxu0 %v535_v45  ;;  %291 = vmatmul.f32.vlgmr.msra.gmra.mxu3 %v541_v49  ;;  %v151_v45 = vld [vmem:[#allocation5 + $0x200] sm:$0xff]  ;;  %v168_v49 = vld [vmem:[#allocation5 + $0x288] sm:$0xff] }
  0x46   :  { %307 = vmatpush.msrb.mxu0 %v154_v13  ;;  %326 = vmatpush.msrb.mxu1 %v171_v14 }
  0x47   :  { %347 = vmatpush.msrb.mxu2 %v186_v15  ;;  %366 = vmatpush.msrb.mxu3 %v203_v16 }
  0x48   :  { %251 = vmatmul.f32.vlgmr.msra.gmra.mxu1 %v537_v46  ;;  %308 = vmatpush.msrb.mxu0 %v153_v17  ;;  %v199_v46 = vld [vmem:[#allocation5 + $0x380] sm:$0xff] }
  0x49   :  { %327 = vmatpush.msrb.mxu1 %v170_v18  ;;  %348 = vmatpush.msrb.mxu2 %v185_v19 }
  0x4a   :  { %367 = vmatpush.msrb.mxu3 %v202_v48  ;;  %309 = vmatpush.msrb.mxu0 %v152_v20 }
  0x4b   :  { %328 = vmatpush.msrb.mxu1 %v169_v21  ;;  %349 = vmatpush.msrb.mxu2 %v184_v22 }
  0x4c   :  { %368 = vmatpush.msrb.mxu3 %v201_v23  ;;  %310 = vmatpush.msrb.mxu0 %v151_v45 }
  0x4d   :  { %329 = vmatpush.msrb.mxu1 %v168_v49  ;;  %350 = vmatpush.msrb.mxu2 %v183_v24 }
  0x4e   :  { %369 = vmatpush.msrb.mxu3 %v200_v25  ;;  %311 = vmatmul.f32.vlgmr.msrb.gmra.mxu0 %v549_v57 }
  0x4f   :  { %351 = vmatmul.f32.vlgmr.msrb.gmra.mxu2 %v557_v7  ;;  %330 = vmatpush.msrb.mxu1 %v167_v26 }
  0x50   :  { %370 = vmatpush.msrb.mxu3 %v199_v46  ;;  %331 = vmatmul.f32.vlgmr.msrb.gmra.mxu1 %v553_v0 }
  0x51   :  { %371 = vmatmul.f32.vlgmr.msrb.gmra.mxu3 %v561_v12 }
  0xa4   :  { %v72_v27 = vpop.xlane.xlu0 %71 }
  0xa5   :  { %417 = vrsqrt.f32 %v72_v27  ;;  %vm80_vm0 = vcmp.eq.f32.partialorder %v72_v27, inf  ;;  %v83_v35 = vand.u32 2147483648, %v72_v27  ;;  %vm82_vm1 = vcmp.eq.f32.partialorder %v72_v27, 0.0 }
  0xab   :  { %v418_v28 = vpop.eup %417 }
  0xac   :  { %v74_v29 = vmul.f32 %v418_v28, %v72_v27 }
  0xae   :  { %v75_v30 = vmul.f32 %v418_v28, %v74_v29 }
  0xb0   :  { %v76_v31 = vmul.f32 0.5, %v75_v30 }
  0xb2   :  { %v77_v32 = vsub.f32 1.5, %v76_v31 }
  0xb4   :  { %v78_v33 = vmul.f32 %v418_v28, %v77_v32 }
  0xb6   :  { %v79_v34 = vmul.f32 %v78_v33, %v72_v27 }
  0xb8   :  { %v81_v57 = vsel %vm80_vm0, %v72_v27, %v79_v34 }
  0xb9   :  { %v84_v7 = vsel %vm82_vm1, %v83_v35, %v81_v57 }
  0xba   :  { %v85_v37 = vadd.f32 1e-05, %v84_v7 }
  0xbc   :  { %419 = vrcp.f32 %v85_v37 }
  0xc2   :  { %v232_v36 = vpop.f32.mrf.mxu0  ;;  %v420_v51 = vpop.eup %419 }
  0xc3   :  { %v379_v54 = vmul.f32 %v420_v51, %v415_v47 }
  0xc5   :  { %v252_v38 = vpop.f32.mrf.mxu1  ;;  %v272_v0 = vpop.f32.mrf.mxu2  ;;  %v384_v61 = vadd.f32 %v382_v55, %v379_v54 }
  0xc6   :  { %v253_v39 = vadd.f32 %v252_v38, %v232_v36 }
  0xc8   :  { %v273_v12 = vadd.f32 %v272_v0, %v253_v39  ;;  %v292_v40 = vpop.f32.mrf.mxu3 }
  0xca   :  { %v293_v41 = vadd.f32 %v292_v40, %v273_v12 }
  0xcb   :  { %v312_v43 = vpop.f32.mrf.mxu0 }
  0xcc   :  { %v313_v44 = vadd.f32 %v312_v43, %v293_v41 }
  0xcd   :  { %v332_v52 = vpop.f32.mrf.mxu1 }
  0xce   :  { %v333_v53 = vadd.f32 %v332_v52, %v313_v44 }
  0xd2   :  { %v352_v56 = vpop.f32.mrf.mxu2 }
  0xd3   :  { %v353_v58 = vadd.f32 %v352_v56, %v333_v53 }
  0xd4   :  { %v372_v59 = vpop.f32.mrf.mxu3 }
  0xd5   :  { %v373_v60 = vadd.f32 %v372_v59, %v353_v58 }
  0xd7   :  { %v385_v63 = vmul.f32 %v384_v61, %v373_v60 }
  0xd9   :  { %v390_v1 = vadd.f32 %v416_v62, %v385_v63 }
  0xdb   :  { %391 = vst [vmem:[#allocation7] sm:$0xff] %v390_v1 }
  0xdc   :  { %402 = dma.vmem_to_hbm [thread:$0]  %s398_s6, 128, %s400_s3, [#allocation4]  }
  0xdd   :  { %497 = dma.done.wait [#allocation4], 128  }
  0xde   :  { %498 = vsyncadd [#allocation4], 4294967168 }
  0xdf   :  { %407 = vsyncpa [#allocation3], 1 }
  0xe0   :  { %408 = vsyncpa [#allocation6], 1 }
  0xe1   :  { %409 = vsyncpa [#allocation4], 1 }

</bundles_post_ra>
